<compile_context>
chip_gen: v6e
topology: v6e:2x2x1
jax: 0.10.0
libtpu: 0.0.40
codegen_flags: <defaults>
</compile_context>

<pallas_src>
import functools

import jax
import jax.numpy as jnp
from jax.experimental import pallas as pl
from jax.experimental.pallas import tpu as pltpu

LANE = 128
MXU_ALIGN = 256            # v6e/v7x MXUs are 256x256; multiple of 128 -> fine on v5e
NEG_SLOPE = 0.1


def _round_up(x, m):
    return (x + m - 1) // m * m


def _pad_dim(d):
    """Tiny dims stay natural (whole-array blocks are always legal); larger dims
    are aligned to the 256-wide MXU."""
    return d if d <= LANE else _round_up(d, MXU_ALIGN)


def _physical_vmem_bytes():
    try:
        return int(pltpu.get_tpu_info().vmem_capacity_bytes)
    except Exception:
        return 64 << 20    # conservative (v7x per-TensorCore)


def _fused_mlp_kernel(x_ref, *refs, num_hidden, h_width, y_width, compute_dtype):
    """One grid step pushes a (tm, in_dim) row-tile of X through every layer.

    refs layout: [w_0, b_0, ..., w_{L-1}, b_{L-1}, w_out, b_out, y_ref, h_ref]
      weights: (K, N_pad) compute_dtype, biases: (1, N_pad) f32.
    """
    n_params = 2 * (num_hidden + 1)
    param_refs = refs[:n_params]
    y_ref, h_ref = refs[n_params], refs[n_params + 1]

    x = x_ref[...].astype(compute_dtype)        # cast in-kernel: no wrapper copy
    acc = None
    for i in range(num_hidden):
        w = param_refs[2 * i][...]
        b = param_refs[2 * i + 1][...]
        acc = jnp.dot(x, w, preferred_element_type=jnp.float32) + b   # MXU, f32 acc
        acc = jnp.where(acc >= 0, acc, NEG_SLOPE * acc)               # leaky_relu(0.1)
        x = acc.astype(compute_dtype)

    if num_hidden == 0:
        # Module semantics: with no hidden layers the "activation" is X itself.
        h_ref[...] = x_ref[...].astype(h_ref.dtype)
    else:
        h_ref[...] = acc[:, :h_width].astype(h_ref.dtype)

    w_out = param_refs[-2][...]
    b_out = param_refs[-1][...]
    y = jnp.dot(x, w_out, preferred_element_type=jnp.float32) + b_out
    y_ref[...] = y[:, :y_width].astype(y_ref.dtype)


def mlp_forward(params, X, *, compute_dtype=jnp.bfloat16, block_m=1024,
                out_dtype=jnp.float32, hidden_out_dtype=jnp.float32):
    """Matches MLP.forward: returns (y, last_hidden_activation)."""
    M, in_dim = X.shape
    hidden = params["hidden"]
    w_out, b_out = params["out"]
    num_hidden = len(hidden)

    if num_hidden:
        H = hidden[0][0].shape[1]
        for w, _ in hidden:
            if w.shape[1] != H:
                raise ValueError("all hidden layers must share the same width")
        if hidden[0][0].shape[0] != in_dim:
            raise ValueError("first hidden layer in_features must match X")
    else:
        H = in_dim
    out_dim = w_out.shape[1]

    H_pad = _pad_dim(H)
    out_pad = _pad_dim(out_dim)
    h_width = H if num_hidden else in_dim

    # ---- pad/cast parameters (zero rows/cols are mathematically inert) ----
    flat = []
    k_prev = in_dim                        # X is un-padded: first-layer K is natural
    for (w, b) in hidden:
        k, n = w.shape
        if (k_prev, H_pad) == (k, n):
            wp = w.astype(compute_dtype)
        else:
            wp = jnp.zeros((k_prev, H_pad), compute_dtype).at[:k, :n].set(
                w.astype(compute_dtype))
        bp = jnp.zeros((1, H_pad), jnp.float32).at[0, :n].set(b.astype(jnp.float32))
        flat += [wp, bp]
        k_prev = H_pad
    k, n = w_out.shape
    if (k_prev, out_pad) == (k, n):
        wop = w_out.astype(compute_dtype)
    else:
        wop = jnp.zeros((k_prev, out_pad), compute_dtype).at[:k, :n].set(
            w_out.astype(compute_dtype))
    bop = jnp.zeros((1, out_pad), jnp.float32).at[0, :n].set(b_out.astype(jnp.float32))
    flat += [wop, bop]
    param_bytes = sum(int(a.size) * a.dtype.itemsize for a in flat)

    # ---- single-buffer grid-invariant params if this JAX supports it ----
    def _param_spec(shape, single):
        if single:
            return pl.BlockSpec(shape, lambda i: (0, 0), pipeline_mode=pl.Buffered(1))
        return pl.BlockSpec(shape, lambda i: (0, 0))

    single_buffer_params = False
    if hasattr(pl, "Buffered"):
        try:
            _param_spec((8, 128), True)
            single_buffer_params = True
        except TypeError:
            single_buffer_params = False

    # ---- generation-aware VMEM budget and row-tile choice ----
    cap = max(_physical_vmem_bytes() - (24 << 20), 16 << 20)

    def footprint(tm, param_buf):
        return (2 * tm * in_dim * X.dtype.itemsize                       # x tiles
                + 2 * tm * out_dim * jnp.dtype(out_dtype).itemsize       # y tiles
                + 2 * tm * h_width * jnp.dtype(hidden_out_dtype).itemsize
                + 4 * tm * max(H_pad, out_pad, in_dim) * 4               # live f32 acc
                + param_buf * param_bytes)

    param_buf = 1 if single_buffer_params else 2
    pack = max(8, 32 // jnp.dtype(compute_dtype).itemsize)   # 16 rows for bf16
    tm = _round_up(min(block_m, _round_up(M, pack)), pack)
    while tm > pack and footprint(tm, param_buf) > cap:
        tm = _round_up(tm // 2, pack)
    # v7x has 2 TensorCores: keep the "parallel" grid >= 2 when the batch allows.
    if pl.cdiv(M, tm) < 2 and M > pack:
        tm = _round_up(pl.cdiv(M, 2), pack)
    grid = (pl.cdiv(M, tm),)

    kernel = functools.partial(
        _fused_mlp_kernel, num_hidden=num_hidden,
        h_width=h_width, y_width=out_dim, compute_dtype=compute_dtype)

    def run(single_buffer):
        in_specs = [pl.BlockSpec((tm, in_dim), lambda i: (i, 0))]
        in_specs += [_param_spec(a.shape, single_buffer) for a in flat]
        out_specs = (pl.BlockSpec((tm, out_dim), lambda i: (i, 0)),
                     pl.BlockSpec((tm, h_width), lambda i: (i, 0)))
        out_shape = (jax.ShapeDtypeStruct((M, out_dim), out_dtype),
                     jax.ShapeDtypeStruct((M, h_width), hidden_out_dtype))

        pbuf = 1 if single_buffer else 2
        vmem_limit = int(min(cap, max(footprint(tm, pbuf) + (4 << 20), 16 << 20)))

        if num_hidden:
            flops = 2 * M * (in_dim * H_pad
                             + (num_hidden - 1) * H_pad * H_pad
                             + H_pad * out_pad)
        else:
            flops = 2 * M * in_dim * out_pad
        bytes_accessed = int(M * in_dim * X.dtype.itemsize + param_bytes
                             + M * out_dim * jnp.dtype(out_dtype).itemsize
                             + M * h_width * jnp.dtype(hidden_out_dtype).itemsize)

        return pl.pallas_call(
            kernel,
            grid=grid,
            in_specs=in_specs,
            out_specs=out_specs,
            out_shape=out_shape,
            compiler_params=pltpu.CompilerParams(
                dimension_semantics=("parallel",),
                vmem_limit_bytes=vmem_limit),
            cost_estimate=pl.CostEstimate(flops=flops, transcendentals=0,
                                          bytes_accessed=bytes_accessed),
        )(X, *flat)

    if single_buffer_params:
        try:
            return run(True)
        except Exception:
            # Fallback: default (double) buffering of parameters.
            return run(False)
    return run(False)


def init_mlp_params(key, input_dim, output_dim, num_hidden_layers, num_hidden_units):
    """nn.Linear-style init (uniform +/- 1/sqrt(fan_in)).  Weights are stored
    pre-transposed as (in_features, out_features) so the kernel computes
    X @ W + b (== PyTorch x @ W.T + b)."""
    params = {"hidden": [], "out": None}
    dims_in = [input_dim] + [num_hidden_units] * max(num_hidden_layers - 1, 0)
    for fan_in in dims_in[:num_hidden_layers]:
        key, kw, kb = jax.random.split(key, 3)
        bound = 1.0 / jnp.sqrt(fan_in)
        w = jax.random.uniform(kw, (fan_in, num_hidden_units), jnp.float32, -bound, bound)
        b = jax.random.uniform(kb, (num_hidden_units,), jnp.float32, -bound, bound)
        params["hidden"].append((w, b))
    fan_in = num_hidden_units if num_hidden_layers else input_dim
    key, kw, kb = jax.random.split(key, 3)
    bound = 1.0 / jnp.sqrt(fan_in)
    w = jax.random.uniform(kw, (fan_in, output_dim), jnp.float32, -bound, bound)
    b = jax.random.uniform(kb, (output_dim,), jnp.float32, -bound, bound)
    params["out"] = (w, b)
    return params


def ref_forward(params, X, compute_dtype=jnp.bfloat16):
    """Plain-JAX reference with the same bf16/f32 mixed precision."""
    x = X.astype(compute_dtype)
    h = X.astype(jnp.float32)
    for w, b in params["hidden"]:
        acc = jnp.dot(x, w.astype(compute_dtype),
                      preferred_element_type=jnp.float32) + b
        acc = jnp.where(acc >= 0, acc, NEG_SLOPE * acc)
        x = acc.astype(compute_dtype)
        h = acc
    w_out, b_out = params["out"]
    y = jnp.dot(x, w_out.astype(compute_dtype),
                preferred_element_type=jnp.float32) + b_out
    return y.astype(jnp.float32), h.astype(jnp.float32)


if __name__ == "__main__":
    key = jax.random.PRNGKey(0)

    # Case 1: small tabular shapes consistent with the module (16 -> 32 -> 32 -> 4).
    batch, input_dim, output_dim, nh, H = 8, 16, 4, 2, 32
    key, kx, kp = jax.random.split(key, 3)
    X = jax.random.normal(kx, (batch, input_dim), dtype=jnp.float32)
    params = init_mlp_params(kp, input_dim, output_dim, nh, H)
    y, h = mlp_forward(params, X)
    jax.block_until_ready((y, h))
    y_ref, h_ref = ref_forward(params, X)
    assert y.shape == (batch, output_dim) and h.shape == (batch, H)
    assert jnp.allclose(y, y_ref, atol=2e-3, rtol=2e-3), "case1 output mismatch"
    assert jnp.allclose(h, h_ref, atol=2e-3, rtol=2e-3), "case1 hidden mismatch"

    # Case 2: ragged batch + >128 hidden width (exercises 256-aligned padding,
    # in-kernel slicing of the hidden output, and a >=2-step "parallel" grid).
    batch, input_dim, output_dim, nh, H = 300, 64, 10, 3, 192
    key, kx, kp = jax.random.split(key, 3)
    X = jax.random.normal(kx, (batch, input_dim), dtype=jnp.float32)
    params = init_mlp_params(kp, input_dim, output_dim, nh, H)
    y, h = mlp_forward(params, X)
    jax.block_until_ready((y, h))
    y_ref, h_ref = ref_forward(params, X)
    assert y.shape == (batch, output_dim) and h.shape == (batch, H)
    assert jnp.allclose(y, y_ref, atol=5e-3, rtol=5e-3), "case2 output mismatch"
    assert jnp.allclose(h, h_ref, atol=5e-3, rtol=5e-3), "case2 hidden mismatch"

    print("KERNEL_OK")
</pallas_src>

<mosaic_0001>
module attributes {stable_mosaic.version = 11 : i64} {
  func.func @_fused_mlp_kernel(%arg0: i32, %arg1: memref<16x16xf32, #tpu.memory_space<vmem>>, %arg2: memref<16x32xbf16, #tpu.memory_space<vmem>>, %arg3: memref<1x32xf32, #tpu.memory_space<vmem>>, %arg4: memref<32x32xbf16, #tpu.memory_space<vmem>>, %arg5: memref<1x32xf32, #tpu.memory_space<vmem>>, %arg6: memref<32x4xbf16, #tpu.memory_space<vmem>>, %arg7: memref<1x4xf32, #tpu.memory_space<vmem>>, %arg8: memref<16x4xf32, #tpu.memory_space<vmem>>, %arg9: memref<16x32xf32, #tpu.memory_space<vmem>>) attributes {dimension_semantics = [#tpu.dimension_semantics<parallel>], iteration_bounds = array<i64: 1>, scalar_prefetch = 0 : i64, scratch_operands = 0 : i64, tpu.core_type = #tpu.core_type<tc>, window_params = [{transform_indices = @transform_0, window_bounds = array<i64: 16, 16>}, {pipeline_mode = #tpu.pipeline_mode<synchronous>, transform_indices = @transform_1, window_bounds = array<i64: 16, 32>}, {pipeline_mode = #tpu.pipeline_mode<synchronous>, transform_indices = @transform_2, window_bounds = array<i64: 1, 32>}, {pipeline_mode = #tpu.pipeline_mode<synchronous>, transform_indices = @transform_3, window_bounds = array<i64: 32, 32>}, {pipeline_mode = #tpu.pipeline_mode<synchronous>, transform_indices = @transform_4, window_bounds = array<i64: 1, 32>}, {pipeline_mode = #tpu.pipeline_mode<synchronous>, transform_indices = @transform_5, window_bounds = array<i64: 32, 4>}, {pipeline_mode = #tpu.pipeline_mode<synchronous>, transform_indices = @transform_6, window_bounds = array<i64: 1, 4>}, {transform_indices = @transform_7, window_bounds = array<i64: 16, 4>}, {transform_indices = @transform_8, window_bounds = array<i64: 16, 32>}]} {
    %c0 = arith.constant 0 : index
    %c0_0 = arith.constant 0 : index
    %0 = vector.load %arg1[%c0, %c0_0] : memref<16x16xf32, #tpu.memory_space<vmem>>, vector<16x16xf32>
    %1 = arith.truncf %0 : vector<16x16xf32> to vector<16x16xbf16>
    %c0_1 = arith.constant 0 : index
    %c0_2 = arith.constant 0 : index
    %2 = vector.load %arg2[%c0_1, %c0_2] : memref<16x32xbf16, #tpu.memory_space<vmem>>, vector<16x32xbf16>
    %c0_3 = arith.constant 0 : index
    %c0_4 = arith.constant 0 : index
    %3 = vector.load %arg3[%c0_3, %c0_4] : memref<1x32xf32, #tpu.memory_space<vmem>>, vector<1x32xf32>
    %cst = arith.constant dense<0.000000e+00> : vector<16x32xf32>
    %4 = tpu.matmul %1, %2, %cst {dimension_numbers = #tpu.dot_dimension_numbers<[1], [0], [0], [1], [0, 0, 1, 1], [], []>} : vector<16x16xbf16>, vector<16x32xbf16>, vector<16x32xf32> -> vector<16x32xf32>
    %5 = vector.broadcast %3 : vector<1x32xf32> to vector<16x32xf32>
    %6 = arith.addf %4, %5 : vector<16x32xf32>
    %cst_5 = arith.constant 0.000000e+00 : f32
    %7 = vector.broadcast %cst_5 : f32 to vector<16x32xf32>
    %8 = arith.cmpf oge, %6, %7 : vector<16x32xf32>
    %cst_6 = arith.constant 1.000000e-01 : f32
    %9 = vector.broadcast %cst_6 : f32 to vector<16x32xf32>
    %10 = arith.mulf %9, %6 : vector<16x32xf32>
    %11 = arith.select %8, %6, %10 : vector<16x32xi1>, vector<16x32xf32>
    %12 = arith.truncf %11 : vector<16x32xf32> to vector<16x32xbf16>
    %c0_7 = arith.constant 0 : index
    %c0_8 = arith.constant 0 : index
    %13 = vector.load %arg4[%c0_7, %c0_8] : memref<32x32xbf16, #tpu.memory_space<vmem>>, vector<32x32xbf16>
    %c0_9 = arith.constant 0 : index
    %c0_10 = arith.constant 0 : index
    %14 = vector.load %arg5[%c0_9, %c0_10] : memref<1x32xf32, #tpu.memory_space<vmem>>, vector<1x32xf32>
    %cst_11 = arith.constant dense<0.000000e+00> : vector<16x32xf32>
    %15 = tpu.matmul %12, %13, %cst_11 {dimension_numbers = #tpu.dot_dimension_numbers<[1], [0], [0], [1], [0, 0, 1, 1], [], []>} : vector<16x32xbf16>, vector<32x32xbf16>, vector<16x32xf32> -> vector<16x32xf32>
    %16 = vector.broadcast %14 : vector<1x32xf32> to vector<16x32xf32>
    %17 = arith.addf %15, %16 : vector<16x32xf32>
    %cst_12 = arith.constant 0.000000e+00 : f32
    %18 = vector.broadcast %cst_12 : f32 to vector<16x32xf32>
    %19 = arith.cmpf oge, %17, %18 : vector<16x32xf32>
    %cst_13 = arith.constant 1.000000e-01 : f32
    %20 = vector.broadcast %cst_13 : f32 to vector<16x32xf32>
    %21 = arith.mulf %20, %17 : vector<16x32xf32>
    %22 = arith.select %19, %17, %21 : vector<16x32xi1>, vector<16x32xf32>
    %23 = arith.truncf %22 : vector<16x32xf32> to vector<16x32xbf16>
    %c0_14 = arith.constant 0 : index
    %c0_15 = arith.constant 0 : index
    %24 = vector.load %arg9[%c0_14, %c0_15] : memref<16x32xf32, #tpu.memory_space<vmem>>, vector<16x32xf32>
    tpu.vector_store %arg9[%c0_14, %c0_15], %22 {strides = array<i32>} : memref<16x32xf32, #tpu.memory_space<vmem>>, vector<16x32xf32>,
    %c0_16 = arith.constant 0 : index
    %c0_17 = arith.constant 0 : index
    %25 = vector.load %arg6[%c0_16, %c0_17] : memref<32x4xbf16, #tpu.memory_space<vmem>>, vector<32x4xbf16>
    %c0_18 = arith.constant 0 : index
    %c0_19 = arith.constant 0 : index
    %26 = vector.load %arg7[%c0_18, %c0_19] : memref<1x4xf32, #tpu.memory_space<vmem>>, vector<1x4xf32>
    %cst_20 = arith.constant dense<0.000000e+00> : vector<16x4xf32>
    %27 = tpu.matmul %23, %25, %cst_20 {dimension_numbers = #tpu.dot_dimension_numbers<[1], [0], [0], [1], [0, 0, 1, 1], [], []>} : vector<16x32xbf16>, vector<32x4xbf16>, vector<16x4xf32> -> vector<16x4xf32>
    %28 = vector.broadcast %26 : vector<1x4xf32> to vector<16x4xf32>
    %29 = arith.addf %27, %28 : vector<16x4xf32>
    %c0_21 = arith.constant 0 : index
    %c0_22 = arith.constant 0 : index
    %30 = vector.load %arg8[%c0_21, %c0_22] : memref<16x4xf32, #tpu.memory_space<vmem>>, vector<16x4xf32>
    tpu.vector_store %arg8[%c0_21, %c0_22], %29 {strides = array<i32>} : memref<16x4xf32, #tpu.memory_space<vmem>>, vector<16x4xf32>,
    return
  }
  func.func @transform_0(%arg0: i32) -> (i32, i32) {
    %c0_i32 = arith.constant 0 : i32
    %c0_i32_0 = arith.constant 0 : i32
    return %arg0, %c0_i32 : i32, i32
  }
  func.func @transform_1(%arg0: i32) -> (i32, i32) {
    %c0_i32 = arith.constant 0 : i32
    %c0_i32_0 = arith.constant 0 : i32
    %c0_i32_1 = arith.constant 0 : i32
    return %c0_i32, %c0_i32_0 : i32, i32
  }
  func.func @transform_2(%arg0: i32) -> (i32, i32) {
    %c0_i32 = arith.constant 0 : i32
    %c0_i32_0 = arith.constant 0 : i32
    %c0_i32_1 = arith.constant 0 : i32
    return %c0_i32, %c0_i32_0 : i32, i32
  }
  func.func @transform_3(%arg0: i32) -> (i32, i32) {
    %c0_i32 = arith.constant 0 : i32
    %c0_i32_0 = arith.constant 0 : i32
    %c0_i32_1 = arith.constant 0 : i32
    return %c0_i32, %c0_i32_0 : i32, i32
  }
  func.func @transform_4(%arg0: i32) -> (i32, i32) {
    %c0_i32 = arith.constant 0 : i32
    %c0_i32_0 = arith.constant 0 : i32
    %c0_i32_1 = arith.constant 0 : i32
    return %c0_i32, %c0_i32_0 : i32, i32
  }
  func.func @transform_5(%arg0: i32) -> (i32, i32) {
    %c0_i32 = arith.constant 0 : i32
    %c0_i32_0 = arith.constant 0 : i32
    %c0_i32_1 = arith.constant 0 : i32
    return %c0_i32, %c0_i32_0 : i32, i32
  }
  func.func @transform_6(%arg0: i32) -> (i32, i32) {
    %c0_i32 = arith.constant 0 : i32
    %c0_i32_0 = arith.constant 0 : i32
    %c0_i32_1 = arith.constant 0 : i32
    return %c0_i32, %c0_i32_0 : i32, i32
  }
  func.func @transform_7(%arg0: i32) -> (i32, i32) {
    %c0_i32 = arith.constant 0 : i32
    %c0_i32_0 = arith.constant 0 : i32
    return %arg0, %c0_i32 : i32, i32
  }
  func.func @transform_8(%arg0: i32) -> (i32, i32) {
    %c0_i32 = arith.constant 0 : i32
    %c0_i32_0 = arith.constant 0 : i32
    return %arg0, %c0_i32 : i32, i32
  }
}

module attributes {stable_mosaic.version = 11 : i64} {
  func.func @_fused_mlp_kernel(%arg0: i32, %arg1: memref<16x16xf32, #tpu.memory_space<vmem>>, %arg2: memref<16x32xbf16, #tpu.memory_space<vmem>>, %arg3: memref<1x32xf32, #tpu.memory_space<vmem>>, %arg4: memref<32x32xbf16, #tpu.memory_space<vmem>>, %arg5: memref<1x32xf32, #tpu.memory_space<vmem>>, %arg6: memref<32x4xbf16, #tpu.memory_space<vmem>>, %arg7: memref<1x4xf32, #tpu.memory_space<vmem>>, %arg8: memref<16x4xf32, #tpu.memory_space<vmem>>, %arg9: memref<16x32xf32, #tpu.memory_space<vmem>>) attributes {dimension_semantics = [#tpu.dimension_semantics<parallel>], iteration_bounds = array<i64: 1>, scalar_prefetch = 0 : i64, scratch_operands = 0 : i64, tpu.core_type = #tpu.core_type<tc>, window_params = [{transform_indices = @transform_0, window_bounds = array<i64: 16, 16>}, {pipeline_mode = #tpu.pipeline_mode<synchronous>, transform_indices = @transform_1, window_bounds = array<i64: 16, 32>}, {pipeline_mode = #tpu.pipeline_mode<synchronous>, transform_indices = @transform_2, window_bounds = array<i64: 1, 32>}, {pipeline_mode = #tpu.pipeline_mode<synchronous>, transform_indices = @transform_3, window_bounds = array<i64: 32, 32>}, {pipeline_mode = #tpu.pipeline_mode<synchronous>, transform_indices = @transform_4, window_bounds = array<i64: 1, 32>}, {pipeline_mode = #tpu.pipeline_mode<synchronous>, transform_indices = @transform_5, window_bounds = array<i64: 32, 4>}, {pipeline_mode = #tpu.pipeline_mode<synchronous>, transform_indices = @transform_6, window_bounds = array<i64: 1, 4>}, {transform_indices = @transform_7, window_bounds = array<i64: 16, 4>}, {transform_indices = @transform_8, window_bounds = array<i64: 16, 32>}]} {
    %c0 = arith.constant 0 : index
    %c0_0 = arith.constant 0 : index
    %0 = vector.load %arg1[%c0, %c0_0] : memref<16x16xf32, #tpu.memory_space<vmem>>, vector<16x16xf32>
    %1 = arith.truncf %0 : vector<16x16xf32> to vector<16x16xbf16>
    %c0_1 = arith.constant 0 : index
    %c0_2 = arith.constant 0 : index
    %2 = vector.load %arg2[%c0_1, %c0_2] : memref<16x32xbf16, #tpu.memory_space<vmem>>, vector<16x32xbf16>
    %c0_3 = arith.constant 0 : index
    %c0_4 = arith.constant 0 : index
    %3 = vector.load %arg3[%c0_3, %c0_4] : memref<1x32xf32, #tpu.memory_space<vmem>>, vector<1x32xf32>
    %cst = arith.constant dense<0.000000e+00> : vector<16x32xf32>
    %4 = tpu.matmul %1, %2, %cst {dimension_numbers = #tpu.dot_dimension_numbers<[1], [0], [0], [1], [0, 0, 1, 1], [], []>} : vector<16x16xbf16>, vector<16x32xbf16>, vector<16x32xf32> -> vector<16x32xf32>
    %5 = vector.broadcast %3 : vector<1x32xf32> to vector<16x32xf32>
    %6 = arith.addf %4, %5 : vector<16x32xf32>
    %cst_5 = arith.constant 0.000000e+00 : f32
    %7 = vector.broadcast %cst_5 : f32 to vector<16x32xf32>
    %8 = arith.cmpf oge, %6, %7 : vector<16x32xf32>
    %cst_6 = arith.constant 1.000000e-01 : f32
    %9 = vector.broadcast %cst_6 : f32 to vector<16x32xf32>
    %10 = arith.mulf %9, %6 : vector<16x32xf32>
    %11 = arith.select %8, %6, %10 : vector<16x32xi1>, vector<16x32xf32>
    %12 = arith.truncf %11 : vector<16x32xf32> to vector<16x32xbf16>
    %c0_7 = arith.constant 0 : index
    %c0_8 = arith.constant 0 : index
    %13 = vector.load %arg4[%c0_7, %c0_8] : memref<32x32xbf16, #tpu.memory_space<vmem>>, vector<32x32xbf16>
    %c0_9 = arith.constant 0 : index
    %c0_10 = arith.constant 0 : index
    %14 = vector.load %arg5[%c0_9, %c0_10] : memref<1x32xf32, #tpu.memory_space<vmem>>, vector<1x32xf32>
    %cst_11 = arith.constant dense<0.000000e+00> : vector<16x32xf32>
    %15 = tpu.matmul %12, %13, %cst_11 {dimension_numbers = #tpu.dot_dimension_numbers<[1], [0], [0], [1], [0, 0, 1, 1], [], []>} : vector<16x32xbf16>, vector<32x32xbf16>, vector<16x32xf32> -> vector<16x32xf32>
    %16 = vector.broadcast %14 : vector<1x32xf32> to vector<16x32xf32>
    %17 = arith.addf %15, %16 : vector<16x32xf32>
    %cst_12 = arith.constant 0.000000e+00 : f32
    %18 = vector.broadcast %cst_12 : f32 to vector<16x32xf32>
    %19 = arith.cmpf oge, %17, %18 : vector<16x32xf32>
    %cst_13 = arith.constant 1.000000e-01 : f32
    %20 = vector.broadcast %cst_13 : f32 to vector<16x32xf32>
    %21 = arith.mulf %20, %17 : vector<16x32xf32>
    %22 = arith.select %19, %17, %21 : vector<16x32xi1>, vector<16x32xf32>
    %23 = arith.truncf %22 : vector<16x32xf32> to vector<16x32xbf16>
    %c0_14 = arith.constant 0 : index
    %c0_15 = arith.constant 0 : index
    %24 = vector.load %arg9[%c0_14, %c0_15] : memref<16x32xf32, #tpu.memory_space<vmem>>, vector<16x32xf32>
    tpu.vector_store %arg9[%c0_14, %c0_15], %22 {strides = array<i32>} : memref<16x32xf32, #tpu.memory_space<vmem>>, vector<16x32xf32>,
    %c0_16 = arith.constant 0 : index
    %c0_17 = arith.constant 0 : index
    %25 = vector.load %arg6[%c0_16, %c0_17] : memref<32x4xbf16, #tpu.memory_space<vmem>>, vector<32x4xbf16>
    %c0_18 = arith.constant 0 : index
    %c0_19 = arith.constant 0 : index
    %26 = vector.load %arg7[%c0_18, %c0_19] : memref<1x4xf32, #tpu.memory_space<vmem>>, vector<1x4xf32>
    %cst_20 = arith.constant dense<0.000000e+00> : vector<16x4xf32>
    %27 = tpu.matmul %23, %25, %cst_20 {dimension_numbers = #tpu.dot_dimension_numbers<[1], [0], [0], [1], [0, 0, 1, 1], [], []>} : vector<16x32xbf16>, vector<32x4xbf16>, vector<16x4xf32> -> vector<16x4xf32>
    %28 = vector.broadcast %26 : vector<1x4xf32> to vector<16x4xf32>
    %29 = arith.addf %27, %28 : vector<16x4xf32>
    %c0_21 = arith.constant 0 : index
    %c0_22 = arith.constant 0 : index
    %30 = vector.load %arg8[%c0_21, %c0_22] : memref<16x4xf32, #tpu.memory_space<vmem>>, vector<16x4xf32>
    tpu.vector_store %arg8[%c0_21, %c0_22], %29 {strides = array<i32>} : memref<16x4xf32, #tpu.memory_space<vmem>>, vector<16x4xf32>,
    return
  }
  func.func @transform_0(%arg0: i32) -> (i32, i32) {
    %c0_i32 = arith.constant 0 : i32
    %c0_i32_0 = arith.constant 0 : i32
    return %arg0, %c0_i32 : i32, i32
  }
  func.func @transform_1(%arg0: i32) -> (i32, i32) {
    %c0_i32 = arith.constant 0 : i32
    %c0_i32_0 = arith.constant 0 : i32
    %c0_i32_1 = arith.constant 0 : i32
    return %c0_i32, %c0_i32_0 : i32, i32
  }
  func.func @transform_2(%arg0: i32) -> (i32, i32) {
    %c0_i32 = arith.constant 0 : i32
    %c0_i32_0 = arith.constant 0 : i32
    %c0_i32_1 = arith.constant 0 : i32
    return %c0_i32, %c0_i32_0 : i32, i32
  }
  func.func @transform_3(%arg0: i32) -> (i32, i32) {
    %c0_i32 = arith.constant 0 : i32
    %c0_i32_0 = arith.constant 0 : i32
    %c0_i32_1 = arith.constant 0 : i32
    return %c0_i32, %c0_i32_0 : i32, i32
  }
  func.func @transform_4(%arg0: i32) -> (i32, i32) {
    %c0_i32 = arith.constant 0 : i32
    %c0_i32_0 = arith.constant 0 : i32
    %c0_i32_1 = arith.constant 0 : i32
    return %c0_i32, %c0_i32_0 : i32, i32
  }
  func.func @transform_5(%arg0: i32) -> (i32, i32) {
    %c0_i32 = arith.constant 0 : i32
    %c0_i32_0 = arith.constant 0 : i32
    %c0_i32_1 = arith.constant 0 : i32
    return %c0_i32, %c0_i32_0 : i32, i32
  }
  func.func @transform_6(%arg0: i32) -> (i32, i32) {
    %c0_i32 = arith.constant 0 : i32
    %c0_i32_0 = arith.constant 0 : i32
    %c0_i32_1 = arith.constant 0 : i32
    return %c0_i32, %c0_i32_0 : i32, i32
  }
  func.func @transform_7(%arg0: i32) -> (i32, i32) {
    %c0_i32 = arith.constant 0 : i32
    %c0_i32_0 = arith.constant 0 : i32
    return %arg0, %c0_i32 : i32, i32
  }
  func.func @transform_8(%arg0: i32) -> (i32, i32) {
    %c0_i32 = arith.constant 0 : i32
    %c0_i32_0 = arith.constant 0 : i32
    return %arg0, %c0_i32 : i32, i32
  }
}

</mosaic_0001>

<bundles_post_ra>
// kernel: tpu_custom_call.1
= control target key start
LH: loop header
LB: loop body
LE: loop exit
PB: predicated region body
PF: predicated region fallthrough
CT: control target
= control target key end

     0   :  { %14 = vsyncpa [#allocation3], 0  ;;  %s552_s0 = inlined_call_operand.hbm [shape: f32[8,16], index: 0, kind: input, shape index: {}]   ;;  %s553_s1 = inlined_call_operand.hbm [shape: bf16[16,32], index: 1, kind: input, shape index: {}]   ;;  %s554_s2 = inlined_call_operand.vmem [shape: f32[1,32], index: 2, kind: input, shape index: {}]   ;;  %s555_s3 = inlined_call_operand.vmem [shape: bf16[32,32], index: 3, kind: input, shape index: {}]   ;;  %s556_s4 = inlined_call_operand.vmem [shape: f32[1,32], index: 4, kind: input, shape index: {}]   ;;  %s557_s5 = inlined_call_operand.vmem [shape: bf16[32,4], index: 5, kind: input, shape index: {}]   ;;  %s558_s6 = inlined_call_operand.vmem [shape: f32[1,4], index: 6, kind: input, shape index: {}]   ;;  %s559_s7 = inlined_call_operand.vmem [shape: f32[8,4], index: 7, kind: output, shape index: {0}]   ;;  %s560_s8 = inlined_call_operand.hbm [shape: f32[8,32], index: 8, kind: output, shape index: {1}]  }
   0x1   :  { %15 = vsyncpa [#allocation6], 0 }
   0x2   :  { %16 = vsyncpa [#allocation4], 0 }
   0x3   :  { %21 = vsyncadd [#allocation3], 128  ;;  %s455_s27 = smov [#allocation2]  }
   0x4   :  { %s22_s28 = sshll.u32 %s455_s27, 4  ;;  %s23_s28 = int_to_ptr.vmem [resolvable:$true] %s22_s28 }
   0x5   :  { %s397_s29 = scalar_lea.vmem %s23_s28, 128  ;;  %s401_s30 = scalar_lea.vmem %s23_s28, 256 }
   0x6   :  { %p398_p0 = scmp.ne.s32.totalorder %s23_s28, %s397_s29  ;;  %p402_p1 = scmp.lt.s32.totalorder %s23_s28, %s23_s28 }
   0x7   :  { %p403_p2 = scmp.lt.s32.totalorder %s401_s30, %s397_s29 }
   0x9   :  { %p404_p3 = por %p403_p2, %p402_p1 }
   0xb   :  { %p405_p4 = pnand %p404_p3, %p398_p0 }
   0xd   :  { %408 = shalt.err (!%p405_p4)
}
   0xe   :  { %s456_s9 = smov 128   ;;  %s457_s10 = smov 8  }
   0xf   :  { %28 = dma.hbm_to_vmem [thread:$0]  %s552_s0, 128, %s23_s28, [#allocation3], %s456_s9, %s456_s9, %s457_s10  }
  0x10   :  { %s458_s13 = smov [#allocation5]  }
  0x11   :  { %s34_s14 = sshll.u32 %s458_s13, 4  ;;  %s35_s14 = int_to_ptr.vmem [resolvable:$true] %s34_s14 }
  0x12   :  { %s417_s15 = scalar_lea.vmem %s35_s14, 128  ;;  %p422_p6 = scmp.lt.s32.totalorder %s35_s14, %s35_s14 }
  0x13   :  { %p418_p5 = scmp.ne.s32.totalorder %s35_s14, %s417_s15  ;;  %p423_p7 = scmp.lt.s32.totalorder %s417_s15, %s417_s15 }
  0x15   :  { %p424_p8 = por %p423_p7, %p422_p6 }
  0x17   :  { %p425_p9 = pnand %p424_p8, %p418_p5 }
  0x19   :  { %428 = shalt.err (!%p425_p9)
}
  0x1a   :  { %s459_s16 = smov 64   ;;  %s460_s17 = smov 4  }
  0x1b   :  { %40 = dma.hbm_to_vmem [thread:$0]  %s553_s1, 128, %s35_s14, [#allocation6], %s459_s16, %s459_s16, %s460_s17  }
  0x1c   :  { %449 = dma.done.wait [#allocation3], 256  }
  0x1d   :  { %450 = vsyncadd [#allocation3], 4294967040 }
  0x1e   :  { %451 = dma.done.wait [#allocation6], 128  }
  0x1f   :  { %452 = vsyncadd [#allocation6], 4294967168  ;;  %v461_v0 = vmov 0.0   ;;  %vm462_vm0 = vmmov 0   ;;  %v384_v1 = vld [vmem:[#allocation5] sm:$0xff]   ;;  %v58_v2 = vld [vmem:[#allocation2] sm:$0xff] }
  0x20   :  { %353 = vmatprep.subr.bf16.mxu0 %v461_v0  ;;  %355 = vmatprep.mubr.msk.bf16.mxu0 %vm462_vm0, %v461_v0  ;;  %v59_v3 = vld [vmem:[#allocation2 + $0x8] sm:$0xff]  ;;  %vm76_vm1 = vcmask 130048   ;;  %v386_v6 = vld [vmem:[%s555_s3] sm:$0xff]   ;;  %vm151_vm4 = vcmask 261120   ;;  %vm272_vm7 = vcmask 31744  }
  0x21   :  { %359 = vmatprep.subr.bf16.mxu1 %v461_v0  ;;  %363 = vmatprep.mubr.msk.bf16.mxu1 %vm462_vm0, %v461_v0  ;;  %v60_v4 = vpack.c.bf16 %v59_v3, %v58_v2  ;;  %v385_v5 = vld [vmem:[%s555_s3 + $0x8] sm:$0xff]   ;;  %v334_v7 = vld [vmem:[%s554_s2] ss:$0 sm:$0xff] }
  0x22   :  { %354 = vmatpush3.bf16.msra.mxu0 %v384_v1  ;;  %360 = vmatpush3.bf16.msra.mxu1 %v385_v5  ;;  %v387_v19 = vld [vmem:[%s557_s5 + $0x8] sm:$0xff]   ;;  %v388_v20 = vld [vmem:[%s557_s5] sm:$0xff]  }
  0x23   :  { %367 = vmatprep.subr.bf16.mxu0 %v461_v0  ;;  %361 = vmatprep.subr.bf16.mxu1 %v461_v0  ;;  %v337_v21 = vld [vmem:[%s556_s4] ss:$0 sm:$0xff] }
  0x24   :  { %v341_v33 = vld [vmem:[%s558_s6] ss:$0 sm:$0xff] }
  0x25   :  { %356 = vmatmul.mubr.msk.bf16.vlgmr.msra.gmra.mxu0 %vm76_vm1, %v60_v4 }
  0x26   :  { %371 = vmatprep.mubr.msk.bf16.mxu0 %vm462_vm0, %v461_v0  ;;  %362 = vmatpush3.bf16.msra.mxu1 %v386_v6 }
  0x27   :  { %368 = vmatpush3.bf16.msra.mxu0 %v387_v19 }
  0x28   :  { %369 = vmatprep.subr.bf16.mxu0 %v461_v0 }
  0x2b   :  { %370 = vmatpush3.bf16.msra.mxu0 %v388_v20 }
  0xe5   :  { %v114_v8 = vpop.f32.mrf.mxu0 }
  0xe6   :  { %v115_v9 = vadd.f32 %v334_v7, %v114_v8 }
  0xe7   :  { %v357_v10 = vpop.f32.mrf.mxu0 }
  0xe8   :  { %v123_v12 = vmul.f32 0.1, %v115_v9  ;;  %vm121_vm2 = vcmp.ge.f32.partialorder %v115_v9, 0.0 }
  0xe9   :  { %v117_v11 = vpop.f32.mrf.mxu0 }
  0xea   :  { %v118_v13 = vadd.f32 %v334_v7, %v117_v11  ;;  %v125_v16 = vsel %vm121_vm2, %v115_v9, %v123_v12 }
  0xeb   :  { %v358_v14 = vpop.f32.mrf.mxu0 }
  0xec   :  { %vm122_vm3 = vcmp.ge.f32.partialorder %v118_v13, 0.0  ;;  %v124_v15 = vmul.f32 0.1, %v118_v13 }
  0xee   :  { %v126_v17 = vsel %vm122_vm3, %v118_v13, %v124_v15 }
  0xef   :  { %v127_v18 = vpack.c.bf16 %v126_v17, %v125_v16 }
  0xf1   :  { %364 = vmatmul.mubr.msk.bf16.vlgmr.msra.gmra.mxu1 %vm151_vm4, %v127_v18 }
 0x1b1   :  { %v189_v22 = vpop.f32.mrf.mxu1 }
 0x1b2   :  { %v190_v23 = vadd.f32 %v337_v21, %v189_v22 }
 0x1b3   :  { %v365_v24 = vpop.f32.mrf.mxu1 }
 0x1b4   :  { %vm196_vm5 = vcmp.ge.f32.partialorder %v190_v23, 0.0  ;;  %v198_v25 = vmul.f32 0.1, %v190_v23 }
 0x1b5   :  { %v192_v26 = vpop.f32.mrf.mxu1 }
 0x1b6   :  { %v200_v27 = vsel %vm196_vm5, %v190_v23, %v198_v25  ;;  %v193_v28 = vadd.f32 %v337_v21, %v192_v26 }
 0x1b7   :  { %203 = vst.msk [vmem:[#allocation8] sm:$0xff] %vm151_vm4, %v200_v27  ;;  %v366_v29 = vpop.f32.mrf.mxu1 }
 0x1b8   :  { %vm197_vm6 = vcmp.ge.f32.partialorder %v193_v28, 0.0  ;;  %v199_v30 = vmul.f32 0.1, %v193_v28 }
 0x1ba   :  { %v201_v31 = vsel %vm197_vm6, %v193_v28, %v199_v30 }
 0x1bb   :  { %v202_v32 = vpack.c.bf16 %v201_v31, %v200_v27  ;;  %204 = vst.msk [vmem:[#allocation8 + $0x8] sm:$0xff] %vm151_vm4, %v201_v31 }
 0x1bd   :  { %372 = vmatmul.mubr.msk.bf16.vlgmr.msra.gmra.mxu0 %vm151_vm4, %v202_v32 }
 0x27d   :  { %v265_v34 = vpop.f32.mrf.mxu0 }
 0x27e   :  { %v266_v35 = vadd.f32 %v341_v33, %v265_v34 }
 0x27f   :  { %v373_v36 = vpop.f32.mrf.mxu0 }
 0x280   :  { %273 = vst.msk [vmem:[#allocation7] sm:$0xff] %vm272_vm7, %v266_v35 }
 0x281   :  { %v268_v37 = vpop.f32.mrf.mxu0 }
 0x283   :  { %v374_v38 = vpop.f32.mrf.mxu0 }
 0x287   :  { %v305_v39 = vld [vmem:[#allocation7] sm:$0xff] }
 0x288   :  { %306 = vst [vmem:[%s559_s7] sm:$0xff] %v305_v39 }
 0x289   :  { %314 = vsyncadd [#allocation4], 128  ;;  %s463_s30 = smov [#allocation8]  }
 0x28a   :  { %s315_s11 = sshll.u32 %s463_s30, 4  ;;  %s316_s11 = int_to_ptr.vmem [resolvable:$true] %s315_s11 }
 0x28b   :  { %s429_s12 = scalar_lea.vmem %s316_s11, 128  ;;  %s433_s13 = scalar_lea.vmem %s316_s11, 256 }
 0x28c   :  { %p430_p10 = scmp.ne.s32.totalorder %s316_s11, %s429_s12  ;;  %p434_p11 = scmp.lt.s32.totalorder %s316_s11, %s316_s11 }
 0x28d   :  { %p435_p12 = scmp.lt.s32.totalorder %s433_s13, %s429_s12 }
 0x28f   :  { %p436_p13 = por %p435_p12, %p434_p11 }
 0x291   :  { %p437_p0 = pnand %p436_p13, %p430_p10 }
 0x293   :  { %440 = shalt.err (!%p437_p0)
}
 0x294   :  { %321 = dma.vmem_to_hbm [thread:$0]  %s316_s11, 128, %s560_s8, [#allocation4], %s456_s9, %s456_s9, %s457_s10  }
 0x295   :  { %453 = dma.done.wait [#allocation4], 256  }
 0x296   :  { %454 = vsyncadd [#allocation4], 4294967040 }
 0x297   :  { %327 = vsyncpa [#allocation3], 1 }
 0x298   :  { %328 = vsyncpa [#allocation6], 1 }
 0x299   :  { %329 = vsyncpa [#allocation4], 1 }

// kernel: tpu_custom_call.1
= control target key start
LH: loop header
LB: loop body
LE: loop exit
PB: predicated region body
PF: predicated region fallthrough
CT: control target
= control target key end

     0   :  { %14 = vsyncpa [#allocation3], 0  ;;  %s552_s0 = inlined_call_operand.hbm [shape: f32[8,16], index: 0, kind: input, shape index: {}]   ;;  %s553_s1 = inlined_call_operand.hbm [shape: bf16[16,32], index: 1, kind: input, shape index: {}]   ;;  %s554_s2 = inlined_call_operand.vmem [shape: f32[1,32], index: 2, kind: input, shape index: {}]   ;;  %s555_s3 = inlined_call_operand.vmem [shape: bf16[32,32], index: 3, kind: input, shape index: {}]   ;;  %s556_s4 = inlined_call_operand.vmem [shape: f32[1,32], index: 4, kind: input, shape index: {}]   ;;  %s557_s5 = inlined_call_operand.vmem [shape: bf16[32,4], index: 5, kind: input, shape index: {}]   ;;  %s558_s6 = inlined_call_operand.vmem [shape: f32[1,4], index: 6, kind: input, shape index: {}]   ;;  %s559_s7 = inlined_call_operand.vmem [shape: f32[8,4], index: 7, kind: output, shape index: {0}]   ;;  %s560_s8 = inlined_call_operand.hbm [shape: f32[8,32], index: 8, kind: output, shape index: {1}]  }
   0x1   :  { %15 = vsyncpa [#allocation6], 0 }
   0x2   :  { %16 = vsyncpa [#allocation4], 0 }
   0x3   :  { %21 = vsyncadd [#allocation3], 128  ;;  %s455_s27 = smov [#allocation2]  }
   0x4   :  { %s22_s28 = sshll.u32 %s455_s27, 4  ;;  %s23_s28 = int_to_ptr.vmem [resolvable:$true] %s22_s28 }
   0x5   :  { %s397_s29 = scalar_lea.vmem %s23_s28, 128  ;;  %s401_s30 = scalar_lea.vmem %s23_s28, 256 }
   0x6   :  { %p398_p0 = scmp.ne.s32.totalorder %s23_s28, %s397_s29  ;;  %p402_p1 = scmp.lt.s32.totalorder %s23_s28, %s23_s28 }
   0x7   :  { %p403_p2 = scmp.lt.s32.totalorder %s401_s30, %s397_s29 }
   0x9   :  { %p404_p3 = por %p403_p2, %p402_p1 }
   0xb   :  { %p405_p4 = pnand %p404_p3, %p398_p0 }
   0xd   :  { %408 = shalt.err (!%p405_p4)
}
   0xe   :  { %s456_s9 = smov 128   ;;  %s457_s10 = smov 8  }
   0xf   :  { %28 = dma.hbm_to_vmem [thread:$0]  %s552_s0, 128, %s23_s28, [#allocation3], %s456_s9, %s456_s9, %s457_s10  }
  0x10   :  { %s458_s13 = smov [#allocation5]  }
  0x11   :  { %s34_s14 = sshll.u32 %s458_s13, 4  ;;  %s35_s14 = int_to_ptr.vmem [resolvable:$true] %s34_s14 }
  0x12   :  { %s417_s15 = scalar_lea.vmem %s35_s14, 128  ;;  %p422_p6 = scmp.lt.s32.totalorder %s35_s14, %s35_s14 }
  0x13   :  { %p418_p5 = scmp.ne.s32.totalorder %s35_s14, %s417_s15  ;;  %p423_p7 = scmp.lt.s32.totalorder %s417_s15, %s417_s15 }
  0x15   :  { %p424_p8 = por %p423_p7, %p422_p6 }
  0x17   :  { %p425_p9 = pnand %p424_p8, %p418_p5 }
  0x19   :  { %428 = shalt.err (!%p425_p9)
}
  0x1a   :  { %s459_s16 = smov 64   ;;  %s460_s17 = smov 4  }
  0x1b   :  { %40 = dma.hbm_to_vmem [thread:$0]  %s553_s1, 128, %s35_s14, [#allocation6], %s459_s16, %s459_s16, %s460_s17  }
  0x1c   :  { %449 = dma.done.wait [#allocation3], 256  }
  0x1d   :  { %450 = vsyncadd [#allocation3], 4294967040 }
  0x1e   :  { %451 = dma.done.wait [#allocation6], 128  }
  0x1f   :  { %452 = vsyncadd [#allocation6], 4294967168  ;;  %v461_v0 = vmov 0.0   ;;  %vm462_vm0 = vmmov 0   ;;  %v384_v1 = vld [vmem:[#allocation5] sm:$0xff]   ;;  %v58_v2 = vld [vmem:[#allocation2] sm:$0xff] }
  0x20   :  { %353 = vmatprep.subr.bf16.mxu0 %v461_v0  ;;  %355 = vmatprep.mubr.msk.bf16.mxu0 %vm462_vm0, %v461_v0  ;;  %v59_v3 = vld [vmem:[#allocation2 + $0x8] sm:$0xff]  ;;  %vm76_vm1 = vcmask 130048   ;;  %v386_v6 = vld [vmem:[%s555_s3] sm:$0xff]   ;;  %vm151_vm4 = vcmask 261120   ;;  %vm272_vm7 = vcmask 31744  }
  0x21   :  { %359 = vmatprep.subr.bf16.mxu1 %v461_v0  ;;  %363 = vmatprep.mubr.msk.bf16.mxu1 %vm462_vm0, %v461_v0  ;;  %v60_v4 = vpack.c.bf16 %v59_v3, %v58_v2  ;;  %v385_v5 = vld [vmem:[%s555_s3 + $0x8] sm:$0xff]   ;;  %v334_v7 = vld [vmem:[%s554_s2] ss:$0 sm:$0xff] }
  0x22   :  { %354 = vmatpush3.bf16.msra.mxu0 %v384_v1  ;;  %360 = vmatpush3.bf16.msra.mxu1 %v385_v5  ;;  %v387_v19 = vld [vmem:[%s557_s5 + $0x8] sm:$0xff]   ;;  %v388_v20 = vld [vmem:[%s557_s5] sm:$0xff]  }
  0x23   :  { %367 = vmatprep.subr.bf16.mxu0 %v461_v0  ;;  %361 = vmatprep.subr.bf16.mxu1 %v461_v0  ;;  %v337_v21 = vld [vmem:[%s556_s4] ss:$0 sm:$0xff] }
  0x24   :  { %v341_v33 = vld [vmem:[%s558_s6] ss:$0 sm:$0xff] }
  0x25   :  { %356 = vmatmul.mubr.msk.bf16.vlgmr.msra.gmra.mxu0 %vm76_vm1, %v60_v4 }
  0x26   :  { %371 = vmatprep.mubr.msk.bf16.mxu0 %vm462_vm0, %v461_v0  ;;  %362 = vmatpush3.bf16.msra.mxu1 %v386_v6 }
  0x27   :  { %368 = vmatpush3.bf16.msra.mxu0 %v387_v19 }
  0x28   :  { %369 = vmatprep.subr.bf16.mxu0 %v461_v0 }
  0x2b   :  { %370 = vmatpush3.bf16.msra.mxu0 %v388_v20 }
  0xe5   :  { %v114_v8 = vpop.f32.mrf.mxu0 }
  0xe6   :  { %v115_v9 = vadd.f32 %v334_v7, %v114_v8 }
  0xe7   :  { %v357_v10 = vpop.f32.mrf.mxu0 }
  0xe8   :  { %v123_v12 = vmul.f32 0.1, %v115_v9  ;;  %vm121_vm2 = vcmp.ge.f32.partialorder %v115_v9, 0.0 }
  0xe9   :  { %v117_v11 = vpop.f32.mrf.mxu0 }
  0xea   :  { %v118_v13 = vadd.f32 %v334_v7, %v117_v11  ;;  %v125_v16 = vsel %vm121_vm2, %v115_v9, %v123_v12 }
  0xeb   :  { %v358_v14 = vpop.f32.mrf.mxu0 }
  0xec   :  { %vm122_vm3 = vcmp.ge.f32.partialorder %v118_v13, 0.0  ;;  %v124_v15 = vmul.f32 0.1, %v118_v13 }
  0xee   :  { %v126_v17 = vsel %vm122_vm3, %v118_v13, %v124_v15 }
  0xef   :  { %v127_v18 = vpack.c.bf16 %v126_v17, %v125_v16 }
  0xf1   :  { %364 = vmatmul.mubr.msk.bf16.vlgmr.msra.gmra.mxu1 %vm151_vm4, %v127_v18 }
 0x1b1   :  { %v189_v22 = vpop.f32.mrf.mxu1 }
 0x1b2   :  { %v190_v23 = vadd.f32 %v337_v21, %v189_v22 }
 0x1b3   :  { %v365_v24 = vpop.f32.mrf.mxu1 }
 0x1b4   :  { %vm196_vm5 = vcmp.ge.f32.partialorder %v190_v23, 0.0  ;;  %v198_v25 = vmul.f32 0.1, %v190_v23 }
 0x1b5   :  { %v192_v26 = vpop.f32.mrf.mxu1 }
 0x1b6   :  { %v200_v27 = vsel %vm196_vm5, %v190_v23, %v198_v25  ;;  %v193_v28 = vadd.f32 %v337_v21, %v192_v26 }
 0x1b7   :  { %203 = vst.msk [vmem:[#allocation8] sm:$0xff] %vm151_vm4, %v200_v27  ;;  %v366_v29 = vpop.f32.mrf.mxu1 }
 0x1b8   :  { %vm197_vm6 = vcmp.ge.f32.partialorder %v193_v28, 0.0  ;;  %v199_v30 = vmul.f32 0.1, %v193_v28 }
 0x1ba   :  { %v201_v31 = vsel %vm197_vm6, %v193_v28, %v199_v30 }
 0x1bb   :  { %v202_v32 = vpack.c.bf16 %v201_v31, %v200_v27  ;;  %204 = vst.msk [vmem:[#allocation8 + $0x8] sm:$0xff] %vm151_vm4, %v201_v31 }
 0x1bd   :  { %372 = vmatmul.mubr.msk.bf16.vlgmr.msra.gmra.mxu0 %vm151_vm4, %v202_v32 }
 0x27d   :  { %v265_v34 = vpop.f32.mrf.mxu0 }
 0x27e   :  { %v266_v35 = vadd.f32 %v341_v33, %v265_v34 }
 0x27f   :  { %v373_v36 = vpop.f32.mrf.mxu0 }
 0x280   :  { %273 = vst.msk [vmem:[#allocation7] sm:$0xff] %vm272_vm7, %v266_v35 }
 0x281   :  { %v268_v37 = vpop.f32.mrf.mxu0 }
 0x283   :  { %v374_v38 = vpop.f32.mrf.mxu0 }
 0x287   :  { %v305_v39 = vld [vmem:[#allocation7] sm:$0xff] }
 0x288   :  { %306 = vst [vmem:[%s559_s7] sm:$0xff] %v305_v39 }
 0x289   :  { %314 = vsyncadd [#allocation4], 128  ;;  %s463_s30 = smov [#allocation8]  }
 0x28a   :  { %s315_s11 = sshll.u32 %s463_s30, 4  ;;  %s316_s11 = int_to_ptr.vmem [resolvable:$true] %s315_s11 }
 0x28b   :  { %s429_s12 = scalar_lea.vmem %s316_s11, 128  ;;  %s433_s13 = scalar_lea.vmem %s316_s11, 256 }
 0x28c   :  { %p430_p10 = scmp.ne.s32.totalorder %s316_s11, %s429_s12  ;;  %p434_p11 = scmp.lt.s32.totalorder %s316_s11, %s316_s11 }
 0x28d   :  { %p435_p12 = scmp.lt.s32.totalorder %s433_s13, %s429_s12 }
 0x28f   :  { %p436_p13 = por %p435_p12, %p434_p11 }
 0x291   :  { %p437_p0 = pnand %p436_p13, %p430_p10 }
 0x293   :  { %440 = shalt.err (!%p437_p0)
}
 0x294   :  { %321 = dma.vmem_to_hbm [thread:$0]  %s316_s11, 128, %s560_s8, [#allocation4], %s456_s9, %s456_s9, %s457_s10  }
 0x295   :  { %453 = dma.done.wait [#allocation4], 256  }
 0x296   :  { %454 = vsyncadd [#allocation4], 4294967040 }
 0x297   :  { %327 = vsyncpa [#allocation3], 1 }
 0x298   :  { %328 = vsyncpa [#allocation6], 1 }
 0x299   :  { %329 = vsyncpa [#allocation4], 1 }

</bundles_post_ra>
